<compile_context>
chip_gen: v6e
topology: v6e:2x2x1
jax: 0.10.0
libtpu: 0.0.40
codegen_flags: <defaults>
</compile_context>

<pallas_src>
import functools

import jax
import jax.numpy as jnp
from jax.experimental import pallas as pl
from jax.experimental.pallas import tpu as pltpu


# ----------------------------------------------------------------------------
# Fused kernel: relu(x@W1) -> relu(.@W2) -> sigmoid(sum(. * w3_row, -1))
# ----------------------------------------------------------------------------
def _discriminator_kernel(x_ref, w1_ref, w2_ref, w3_ref, o_ref, *, use_bf16):
    x = x_ref[...]                                    # (TILE_M, D)
    w1 = w1_ref[...]
    w2 = w2_ref[...]
    if use_bf16:                                      # bf16 MXU operands (v6e/v7x)
        x = x.astype(jnp.bfloat16)
        w1 = w1.astype(jnp.bfloat16)
        w2 = w2.astype(jnp.bfloat16)

    h1 = jnp.maximum(
        jnp.dot(x, w1, preferred_element_type=jnp.float32), 0.0)
    if use_bf16:
        h1 = h1.astype(jnp.bfloat16)
    h2 = jnp.maximum(
        jnp.dot(h1, w2, preferred_element_type=jnp.float32), 0.0)

    # dense_3: (D, 1) matvec as VPU multiply + XLU reduce (keeps the MXU out of
    # the epilogue and avoids a lane-sparse (D, 1) weight tile).
    logits = jnp.sum(h2 * w3_ref[...], axis=-1)       # (TILE_M,)

    # sigmoid >= 0, so torch.abs(output) is an exact identity; omitted here.
    o_ref[...] = jax.nn.sigmoid(logits)[None, :].astype(o_ref.dtype)  # (1, TILE_M)


def discriminator_forward(x, w1, w2, w3, *, tile_m=None, use_bf16=False):
    """Fused Discriminator forward.

    x: [N, D], w1/w2: [D, D], w3: [D, 1].  Returns [N, 1] float32.
    """
    n, d = x.shape

    # Row tile: biggest power-of-two up to 256 (MXU-native on v6e/v7x; still a
    # fine multiple of the 128x128 v5e tile), at least 8 sublanes.
    if tile_m is None:
        tile_m = int(min(256, max(8, pl.next_power_of_2(n))))
    num_tiles = int(pl.cdiv(n, tile_m))
    n_pad = num_tiles * tile_m
    if n_pad != n:
        x = jnp.pad(x, ((0, n_pad - n), (0, 0)))

    # dense_3 weight as a (1, D) row for the in-kernel VPU/XLU reduction.
    w3_row = w3.reshape(1, d)

    kernel = functools.partial(_discriminator_kernel, use_bf16=use_bf16)

    out = pl.pallas_call(
        kernel,
        grid=(num_tiles,),
        in_specs=[
            pl.BlockSpec((tile_m, d), lambda i: (i, 0)),   # streamed row tile
            pl.BlockSpec((d, d), lambda i: (0, 0)),        # resident W1
            pl.BlockSpec((d, d), lambda i: (0, 0)),        # resident W2
            pl.BlockSpec((1, d), lambda i: (0, 0)),        # resident w3 row
        ],
        # Lane-dense output slab: (1, N_pad), each grid step owns TILE_M lanes.
        out_specs=pl.BlockSpec((1, tile_m), lambda i: (0, i)),
        out_shape=jax.ShapeDtypeStruct((1, n_pad), jnp.float32),
        compiler_params=pltpu.CompilerParams(
            dimension_semantics=("parallel",)),            # v7x: 2 TCs
    )(x, w1, w2, w3_row)

    # Back to the module's (N, 1) output shape; drop padded rows.
    return out.reshape(n_pad, 1)[:n]


# ----------------------------------------------------------------------------
# Pure-JAX reference (mirrors the PyTorch module exactly) for verification.
# ----------------------------------------------------------------------------
def discriminator_ref(x, w1, w2, w3):
    h1 = jnp.maximum(x @ w1, 0.0)
    h2 = jnp.maximum(h1 @ w2, 0.0)
    return jnp.abs(jax.nn.sigmoid(h2 @ w3))


# ----------------------------------------------------------------------------
if __name__ == "__main__":
    out_dim = 32

    key = jax.random.PRNGKey(0)
    kx, k1, k2, k3, kx2 = jax.random.split(key, 5)

    # Weights ~ Normal(0, 0.01) like nn.init.normal_(mean=0, std=0.01).
    w1 = 0.01 * jax.random.normal(k1, (out_dim, out_dim), jnp.float32)
    w2 = 0.01 * jax.random.normal(k2, (out_dim, out_dim), jnp.float32)
    w3 = 0.01 * jax.random.normal(k3, (out_dim, 1), jnp.float32)

    # Case 1: single-tile batch (N == 32).
    x = jax.random.normal(kx, (32, out_dim), jnp.float32)
    out = discriminator_forward(x, w1, w2, w3)
    jax.block_until_ready(out)
    ref = discriminator_ref(x, w1, w2, w3)
    assert out.shape == (32, 1)
    assert bool(jnp.all(jnp.isfinite(out)))
    assert bool(jnp.all((out >= 0.0) & (out <= 1.0)))
    assert bool(jnp.allclose(out, ref, atol=1e-5, rtol=1e-5))

    # Case 2: multi-tile batch with padding (N == 300 -> 2 tiles of 256).
    x2 = jax.random.normal(kx2, (300, out_dim), jnp.float32)
    out2 = discriminator_forward(x2, w1, w2, w3)
    jax.block_until_ready(out2)
    ref2 = discriminator_ref(x2, w1, w2, w3)
    assert out2.shape == (300, 1)
    assert bool(jnp.allclose(out2, ref2, atol=1e-5, rtol=1e-5))

    print("KERNEL_OK")
</pallas_src>

<mosaic_0001>
module attributes {stable_mosaic.version = 11 : i64} {
  func.func @_discriminator_kernel(%arg0: i32, %arg1: memref<32x32xf32, #tpu.memory_space<vmem>>, %arg2: memref<32x32xf32, #tpu.memory_space<vmem>>, %arg3: memref<32x32xf32, #tpu.memory_space<vmem>>, %arg4: memref<1x32xf32, #tpu.memory_space<vmem>>, %arg5: memref<1x32xf32, #tpu.memory_space<vmem>>) attributes {dimension_semantics = [#tpu.dimension_semantics<parallel>], iteration_bounds = array<i64: 1>, scalar_prefetch = 0 : i64, scratch_operands = 0 : i64, tpu.core_type = #tpu.core_type<tc>, window_params = [{transform_indices = @transform_0, window_bounds = array<i64: 32, 32>}, {pipeline_mode = #tpu.pipeline_mode<synchronous>, transform_indices = @transform_1, window_bounds = array<i64: 32, 32>}, {pipeline_mode = #tpu.pipeline_mode<synchronous>, transform_indices = @transform_2, window_bounds = array<i64: 32, 32>}, {pipeline_mode = #tpu.pipeline_mode<synchronous>, transform_indices = @transform_3, window_bounds = array<i64: 1, 32>}, {transform_indices = @transform_4, window_bounds = array<i64: 1, 32>}]} {
    %c0 = arith.constant 0 : index
    %c0_0 = arith.constant 0 : index
    %0 = vector.load %arg1[%c0, %c0_0] : memref<32x32xf32, #tpu.memory_space<vmem>>, vector<32x32xf32>
    %c0_1 = arith.constant 0 : index
    %c0_2 = arith.constant 0 : index
    %1 = vector.load %arg2[%c0_1, %c0_2] : memref<32x32xf32, #tpu.memory_space<vmem>>, vector<32x32xf32>
    %c0_3 = arith.constant 0 : index
    %c0_4 = arith.constant 0 : index
    %2 = vector.load %arg3[%c0_3, %c0_4] : memref<32x32xf32, #tpu.memory_space<vmem>>, vector<32x32xf32>
    %cst = arith.constant dense<0.000000e+00> : vector<32x32xf32>
    %3 = tpu.matmul %0, %1, %cst {dimension_numbers = #tpu.dot_dimension_numbers<[1], [0], [0], [1], [0, 0, 1, 1], [], []>} : vector<32x32xf32>, vector<32x32xf32>, vector<32x32xf32> -> vector<32x32xf32>
    %cst_5 = arith.constant 0.000000e+00 : f32
    %4 = vector.broadcast %cst_5 : f32 to vector<32x32xf32>
    %5 = arith.maximumf %3, %4 : vector<32x32xf32>
    %cst_6 = arith.constant dense<0.000000e+00> : vector<32x32xf32>
    %6 = tpu.matmul %5, %2, %cst_6 {dimension_numbers = #tpu.dot_dimension_numbers<[1], [0], [0], [1], [0, 0, 1, 1], [], []>} : vector<32x32xf32>, vector<32x32xf32>, vector<32x32xf32> -> vector<32x32xf32>
    %cst_7 = arith.constant 0.000000e+00 : f32
    %7 = vector.broadcast %cst_7 : f32 to vector<32x32xf32>
    %8 = arith.maximumf %6, %7 : vector<32x32xf32>
    %c0_8 = arith.constant 0 : index
    %c0_9 = arith.constant 0 : index
    %9 = vector.load %arg4[%c0_8, %c0_9] : memref<1x32xf32, #tpu.memory_space<vmem>>, vector<1x32xf32>
    %10 = vector.broadcast %9 : vector<1x32xf32> to vector<32x32xf32>
    %11 = arith.mulf %8, %10 : vector<32x32xf32>
    %cst_10 = arith.constant dense<0.000000e+00> : vector<32xf32>
    %12 = vector.multi_reduction <add>, %11, %cst_10 [1] : vector<32x32xf32> to vector<32xf32>
    %13 = arith.negf %12 : vector<32xf32>
    %14 = math.exp %13 : vector<32xf32>
    %cst_11 = arith.constant 1.000000e+00 : f32
    %15 = vector.broadcast %cst_11 : f32 to vector<32xf32>
    %16 = arith.addf %15, %14 : vector<32xf32>
    %17 = arith.divf %15, %16 : vector<32xf32>
    %18 = vector.shape_cast %17 : vector<32xf32> to vector<1x32xf32>
    %c0_12 = arith.constant 0 : index
    %c0_13 = arith.constant 0 : index
    %19 = vector.load %arg5[%c0_12, %c0_13] : memref<1x32xf32, #tpu.memory_space<vmem>>, vector<1x32xf32>
    tpu.vector_store %arg5[%c0_12, %c0_13], %18 {strides = array<i32>} : memref<1x32xf32, #tpu.memory_space<vmem>>, vector<1x32xf32>,
    return
  }
  func.func @transform_0(%arg0: i32) -> (i32, i32) {
    %c0_i32 = arith.constant 0 : i32
    %c0_i32_0 = arith.constant 0 : i32
    return %arg0, %c0_i32 : i32, i32
  }
  func.func @transform_1(%arg0: i32) -> (i32, i32) {
    %c0_i32 = arith.constant 0 : i32
    %c0_i32_0 = arith.constant 0 : i32
    %c0_i32_1 = arith.constant 0 : i32
    return %c0_i32, %c0_i32_0 : i32, i32
  }
  func.func @transform_2(%arg0: i32) -> (i32, i32) {
    %c0_i32 = arith.constant 0 : i32
    %c0_i32_0 = arith.constant 0 : i32
    %c0_i32_1 = arith.constant 0 : i32
    return %c0_i32, %c0_i32_0 : i32, i32
  }
  func.func @transform_3(%arg0: i32) -> (i32, i32) {
    %c0_i32 = arith.constant 0 : i32
    %c0_i32_0 = arith.constant 0 : i32
    %c0_i32_1 = arith.constant 0 : i32
    return %c0_i32, %c0_i32_0 : i32, i32
  }
  func.func @transform_4(%arg0: i32) -> (i32, i32) {
    %c0_i32 = arith.constant 0 : i32
    %c0_i32_0 = arith.constant 0 : i32
    return %c0_i32, %arg0 : i32, i32
  }
}

</mosaic_0001>

<bundles_post_ra>
// kernel: tpu_custom_call.1
= control target key start
LH: loop header
LB: loop body
LE: loop exit
PB: predicated region body
PF: predicated region fallthrough
CT: control target
= control target key end

     0   :  { %9 = vsyncpa [#allocation3], 0  ;;  %s594_s0 = inlined_call_operand.hbm [shape: f32[32,32], index: 0, kind: input, shape index: {}]   ;;  %s595_s1 = inlined_call_operand.hbm [shape: f32[32,32], index: 1, kind: input, shape index: {}]   ;;  %s596_s2 = inlined_call_operand.hbm [shape: f32[32,32], index: 2, kind: input, shape index: {}]   ;;  %s597_s3 = inlined_call_operand.vmem [shape: f32[1,32], index: 3, kind: input, shape index: {}]   ;;  %s598_s4 = inlined_call_operand.hbm [shape: f32[1,32], index: 4, kind: output, shape index: {}]  }
   0x1   :  { %10 = vsyncpa [#allocation6], 0 }
   0x2   :  { %11 = vsyncpa [#allocation4], 0  ;;  %s536_s15 = smov [#allocation5]   ;;  %s537_s17 = smov [#allocation2]  }
   0x3   :  { %s29_s16 = sshll.u32 %s536_s15, 4  ;;  %s17_s18 = sshll.u32 %s537_s17, 4  ;;  %s30_s16 = int_to_ptr.vmem [resolvable:$true] %s29_s16  ;;  %s18_s18 = int_to_ptr.vmem [resolvable:$true] %s17_s18 }
   0x4   :  { %s458_s19 = scalar_lea.vmem %s30_s16, 512  ;;  %p463_p1 = scmp.lt.s32.totalorder %s30_s16, %s30_s16 }
   0x5   :  { %p459_p0 = scmp.ne.s32.totalorder %s30_s16, %s458_s19  ;;  %p464_p2 = scmp.lt.s32.totalorder %s458_s19, %s458_s19 }
   0x7   :  { %p465_p3 = por %p464_p2, %p463_p1 }
   0x9   :  { %p466_p4 = pnand %p465_p3, %p459_p0 }
   0xb   :  { %469 = shalt.err (!%p466_p4)
}
   0xc   :  { %s538_s20 = smov 128   ;;  %s539_s21 = smov 8  }
   0xd   :  { %35 = dma.hbm_to_vmem [thread:$0]  %s595_s1, 512, %s30_s16, [#allocation6], %s538_s20, %s538_s20, %s539_s21  }
   0xe   :  { %s478_s24 = scalar_lea.vmem %s18_s18, 512  ;;  %p483_p6 = scmp.lt.s32.totalorder %s18_s18, %s18_s18 }
   0xf   :  { %p479_p5 = scmp.ne.s32.totalorder %s18_s18, %s478_s24  ;;  %p484_p7 = scmp.lt.s32.totalorder %s478_s24, %s478_s24 }
  0x11   :  { %p485_p8 = por %p484_p7, %p483_p6 }
  0x13   :  { %p486_p9 = pnand %p485_p8, %p479_p5 }
  0x15   :  { %489 = shalt.err (!%p486_p9)
}
  0x16   :  { %23 = dma.hbm_to_vmem [thread:$0]  %s594_s0, 512, %s18_s18, [#allocation3], %s538_s20, %s538_s20, %s539_s21  }
  0x17   :  { %s540_s27 = smov [#allocation7]  }
  0x18   :  { %s41_s28 = sshll.u32 %s540_s27, 4  ;;  %s42_s28 = int_to_ptr.vmem [resolvable:$true] %s41_s28 }
  0x19   :  { %s498_s29 = scalar_lea.vmem %s42_s28, 512  ;;  %p503_p11 = scmp.lt.s32.totalorder %s42_s28, %s42_s28 }
  0x1a   :  { %p499_p10 = scmp.ne.s32.totalorder %s42_s28, %s498_s29  ;;  %p504_p12 = scmp.lt.s32.totalorder %s498_s29, %s498_s29 }
  0x1c   :  { %p505_p13 = por %p504_p12, %p503_p11 }
  0x1e   :  { %p506_p0 = pnand %p505_p13, %p499_p10 }
  0x20   :  { %509 = shalt.err (!%p506_p0)
}
  0x21   :  { %47 = dma.hbm_to_vmem [thread:$0]  %s596_s2, 512, %s42_s28, [#allocation6], %s538_s20, %s538_s20, %s539_s21  }
  0x22   :  { %530 = dma.done.wait [#allocation3], 512  }
  0x23   :  { %531 = vsyncadd [#allocation3], 4294966784 }
  0x24   :  { %532 = dma.done.wait [#allocation6], 1024  }
  0x25   :  { %533 = vsyncadd [#allocation6], 4294966272  ;;  %vm71_vm0 = vcmask 261120   ;;  %v66_v0 = vld [vmem:[#allocation5 + $0x18] sm:$0xff]  ;;  %v65_v1 = vld [vmem:[#allocation5 + $0x10] sm:$0xff]  ;;  %v325_v51 = vlaneseq  ;;  %vm336_vm1 = vcmask 130112  }
  0x26   :  { %400 = vmatprep.subr.mxu0 %v66_v0  ;;  %v59_v2 = vld [vmem:[#allocation2] sm:$0xff]  ;;  %v64_v3 = vld [vmem:[#allocation5 + $0x8] sm:$0xff]  ;;  %v70_v4 = vld [vmem:[#allocation7 + $0x18] sm:$0xff]  ;;  %vm343_vm2 = vcmask 195712   ;;  %vm350_vm3 = vcmask 261312   ;;  %vm353_vm4 = vcmask 253952  }
  0x27   :  { %401 = vmatpush3.msra.mxu0 %v66_v0  ;;  %408 = vmatprep.mubr.msk.f32.mxu0 %vm71_vm0, %v59_v2  ;;  %v63_v5 = vld [vmem:[#allocation5] sm:$0xff]  ;;  %v60_v6 = vld [vmem:[#allocation2 + $0x8] sm:$0xff]  ;;  %v61_v7 = vld [vmem:[#allocation2 + $0x10] sm:$0xff]  ;;  %v326_v54 = vand.u32 127, %v325_v51  ;;  %v328_v55 = vshrl.u32 %v325_v51, 7 }
  0x28   :  { %402 = vmatprep.subr.mxu0 %v65_v1  ;;  %414 = vmatprep.subr.mxu1 %v70_v4  ;;  %v62_v8 = vld [vmem:[#allocation2 + $0x18] sm:$0xff]  ;;  %v69_v9 = vld [vmem:[#allocation7 + $0x10] sm:$0xff]  ;;  %v68_v10 = vld [vmem:[#allocation7 + $0x8] sm:$0xff] }
  0x29   :  { %403 = vmatpush3.msra.mxu0 %v65_v1  ;;  %415 = vmatpush3.msra.mxu1 %v70_v4  ;;  %v67_v11 = vld [vmem:[#allocation7] sm:$0xff]  ;;  %v331_v56 = vadd.s32 4294967288, %v326_v54  ;;  %v338_v57 = vadd.s32 4294967280, %v326_v54  ;;  %v329_v58 = vsub.s32 %v326_v54, %v328_v55  ;;  %v345_v60 = vadd.s32 4294967272, %v326_v54 }
  0x2a   :  { %404 = vmatprep.subr.mxu0 %v64_v3  ;;  %416 = vmatprep.subr.mxu1 %v69_v9  ;;  %v379_v25 = vld [vmem:[%s597_s3] ss:$0 sm:$0xff]  ;;  %s541_s3 = smov [#allocation8]  }
  0x2b   :  { %405 = vmatpush3.msra.mxu0 %v64_v3  ;;  %417 = vmatpush3.msra.mxu1 %v69_v9  ;;  %v334_v59 = vsub.s32 %v331_v56, %v328_v55  ;;  %v341_v62 = vsub.s32 %v338_v57, %v328_v55  ;;  %v348_v3 = vsub.s32 %v345_v60, %v328_v55  ;;  %s361_s5 = sshll.u32 %s541_s3, 4  ;;  %s362_s5 = int_to_ptr.vmem [resolvable:$true] %s361_s5 }
  0x2c   :  { %406 = vmatprep.subr.mxu0 %v63_v5  ;;  %418 = vmatprep.subr.mxu1 %v68_v10  ;;  %s510_s6 = scalar_lea.vmem %s362_s5, 16  ;;  %s514_s7 = scalar_lea.vmem %s362_s5, 32 }
  0x2d   :  { %407 = vmatpush3.msra.mxu0 %v63_v5  ;;  %419 = vmatpush3.msra.mxu1 %v68_v10  ;;  %p511_p1 = scmp.ne.s32.totalorder %s362_s5, %s510_s6  ;;  %p515_p2 = scmp.lt.s32.totalorder %s362_s5, %s362_s5 }
  0x2e   :  { %409 = vmatmul.mubr.msk.f32.vlgmr.msra.gmra.mxu0 %vm71_vm0, %v60_v6  ;;  %420 = vmatprep.subr.mxu1 %v67_v11  ;;  %p516_p3 = scmp.lt.s32.totalorder %s514_s7, %s510_s6 }
  0x2f   :  { %411 = vmatprep.mubr.msk.f32.mxu0 %vm71_vm0, %v61_v7  ;;  %421 = vmatpush3.msra.mxu1 %v67_v11 }
  0x30   :  { %p517_p4 = por %p516_p3, %p515_p2 }
  0x32   :  { %412 = vmatmul.mubr.msk.f32.gmra.mxu0 %vm71_vm0, %v62_v8  ;;  %p518_p5 = pnand %p517_p4, %p511_p1 }
  0xee   :  { %v410_v12 = vpop.f32.mrf.mxu0 }
  0xef   :  { %v170_v15 = vmax.f32 %v410_v12, 0.0 }
  0xf0   :  { %v150_v13 = vpop.f32.mrf.mxu0 }
  0xf1   :  { %v169_v14 = vmax.f32 %v150_v13, 0.0 }
  0xf2   :  { %v413_v16 = vpop.f32.mrf.mxu0 }
  0xf3   :  { %422 = vmatprep.mubr.msk.f32.mxu1 %vm71_vm0, %v169_v14  ;;  %v172_v19 = vmax.f32 %v413_v16, 0.0 }
  0xf4   :  { %v160_v17 = vpop.f32.mrf.mxu0  ;;  %423 = vmatmul.mubr.msk.f32.vlgmr.msra.gmra.mxu1 %vm71_vm0, %v170_v15 }
  0xf5   :  { %v171_v18 = vmax.f32 %v160_v17, 0.0 }
  0xf7   :  { %425 = vmatprep.mubr.msk.f32.mxu1 %vm71_vm0, %v171_v18 }
  0xf8   :  { %426 = vmatmul.mubr.msk.f32.gmra.mxu1 %vm71_vm0, %v172_v19 }
 0x1b4   :  { %v424_v20 = vpop.f32.mrf.mxu1 }
 0x1b5   :  { %v271_v22 = vmax.f32 %v424_v20, 0.0 }
 0x1b6   :  { %v251_v21 = vpop.f32.mrf.mxu1 }
 0x1b7   :  { %v270_v23 = vmax.f32 %v251_v21, 0.0  ;;  %v282_v31 = vmul.f32 %v379_v25, %v271_v22 }
 0x1b8   :  { %v427_v24 = vpop.f32.mrf.mxu1 }
 0x1b9   :  { %v281_v26 = vmul.f32 %v379_v25, %v270_v23  ;;  %v273_v28 = vmax.f32 %v427_v24, 0.0  ;;  %v288_v33 = vsel %vm71_vm0, %v282_v31, 0.0 }
 0x1ba   :  { %v261_v27 = vpop.f32.mrf.mxu1 }
 0x1bb   :  { %v272_v29 = vmax.f32 %v261_v27, 0.0  ;;  %v285_v30 = vsel %vm71_vm0, %v281_v26, 0.0  ;;  %v284_v35 = vmul.f32 %v379_v25, %v273_v28 }
 0x1bc   :  { %286 = vadd.xlane.f32.xlu0 %v285_v30 }
 0x1bd   :  { %v283_v32 = vmul.f32 %v379_v25, %v272_v29  ;;  %v294_v36 = vsel %vm71_vm0, %v284_v35, 0.0 }
 0x1bf   :  { %v291_v34 = vsel %vm71_vm0, %v283_v32, 0.0 }
 0x1c0   :  { %289 = vadd.xlane.f32.xlu0 %v288_v33  ;;  %292 = vadd.xlane.f32.xlu1 %v291_v34 }
 0x1c4   :  { %295 = vadd.xlane.f32.xlu1 %v294_v36 }
 0x245   :  { %v287_v37 = vpop.xlane.xlu0 %286 }
 0x246   :  { %v380_v38 = vmul.f32 -1.442695, %v287_v37 }
 0x248   :  { %434 = vpow2.f32 %v380_v38 }
 0x249   :  { %v290_v39 = vpop.xlane.xlu0 %289  ;;  %v293_v40 = vpop.xlane.xlu1 %292 }
 0x24a   :  { %v381_v41 = vmul.f32 -1.442695, %v290_v39  ;;  %v382_v42 = vmul.f32 -1.442695, %v293_v40 }
 0x24c   :  { %436 = vpow2.f32 %v381_v41 }
 0x24d   :  { %438 = vpow2.f32 %v382_v42  ;;  %v296_v43 = vpop.xlane.xlu1 %295 }
 0x24e   :  { %v383_v44 = vmul.f32 -1.442695, %v296_v43 }
 0x250   :  { %440 = vpow2.f32 %v383_v44 }
 0x255   :  { %v435_v45 = vpop.eup %434 }
 0x256   :  { %v309_v46 = vadd.f32 1.0, %v435_v45 }
 0x258   :  { %442 = vrcp.f32 %v309_v46 }
 0x259   :  { %v437_v47 = vpop.eup %436 }
 0x25a   :  { %v439_v48 = vpop.eup %438  ;;  %v310_v49 = vadd.f32 1.0, %v437_v47 }
 0x25b   :  { %v311_v50 = vadd.f32 1.0, %v439_v48 }
 0x25c   :  { %444 = vrcp.f32 %v310_v49 }
 0x25d   :  { %v441_v52 = vpop.eup %440  ;;  %446 = vrcp.f32 %v311_v50 }
 0x25e   :  { %v312_v53 = vadd.f32 1.0, %v441_v52 }
 0x260   :  { %448 = vrcp.f32 %v312_v53 }
 0x265   :  { %v443_v61 = vpop.eup %442 }
 0x266   :  { %v330_v1 = vrot.slane %v443_v61, %v329_v58 }
 0x269   :  { %v445_v63 = vpop.eup %444 }
 0x26a   :  { %v447_v0 = vpop.eup %446  ;;  %v335_v2 = vrot.slane %v445_v63, %v334_v59 }
 0x26b   :  { %v342_v4 = vrot.slane %v447_v0, %v341_v62 }
 0x26c   :  { %v337_v5 = vsel %vm336_vm1, %v335_v2, %v330_v1 }
 0x26d   :  { %v449_v6 = vpop.eup %448  ;;  %v344_v8 = vsel %vm343_vm2, %v342_v4, %v337_v5 }
 0x26e   :  { %v349_v7 = vrot.slane %v449_v6, %v348_v3 }
 0x270   :  { %v351_v9 = vsel %vm350_vm3, %v349_v7, %v344_v8 }
 0x271   :  { %354 = vst.msk [vmem:[#allocation8] sm:$0x1] %vm353_vm4, %v351_v9 }
 0x272   :  { %521 = shalt.err (!%p518_p5)
}
 0x273   :  { %364 = dma.vmem_to_hbm [thread:$0]  %s362_s5, 16, %s598_s4, [#allocation4]  }
 0x274   :  { %534 = dma.done.wait [#allocation4], 16  }
 0x275   :  { %535 = vsyncadd [#allocation4], 4294967280 }
 0x276   :  { %368 = vsyncpa [#allocation3], 1 }
 0x277   :  { %369 = vsyncpa [#allocation6], 1 }
 0x278   :  { %370 = vsyncpa [#allocation4], 1 }

</bundles_post_ra>
